<compile_context>
chip_gen: v6e
topology: v6e:2x2x1
jax: 0.10.0
libtpu: 0.0.40
codegen_flags: <defaults>
</compile_context>

<pallas_src>
import jax
import jax.numpy as jnp
from jax.experimental import pallas as pl
from jax.experimental.pallas import tpu as pltpu

EPS = 1e-3  # matches nn.BatchNorm2d(C, eps=0.001) in the PyTorch spec


def inception_kernel(p_ref, w_ref, b_ref, o_ref):
    # p_ref : (1, 9*I, H*W)  im2col patches, K ordered as i*9 + kh*3 + kw (channel-major)
    # w_ref : (Cout, 9*I)    combined 1x1 + 3x3 weight, BN scale pre-folded
    # b_ref : (Cout, 1)      fused conv-bias + BN shift
    # o_ref : (1, Cout, H*W) lane-dense channel-major output (NCHW, spatial flattened)
    y = jnp.dot(w_ref[...], p_ref[0], preferred_element_type=jnp.float32)
    y = y + b_ref[...]
    o_ref[0] = jnp.maximum(y, 0.0).astype(o_ref.dtype)


def _im2col_nchw(x):
    """(N, I, H, W) -> (N, 9*I, H*W) patches for a 3x3 / stride-1 / pad-1 conv.

    K index ordering is i*9 + kh*3 + kw, matching w_oihw.reshape(Cout, I*9)."""
    N, I, H, W = x.shape
    xpad = jnp.pad(x, ((0, 0), (0, 0), (1, 1), (1, 1)))
    taps = [xpad[:, :, kh:kh + H, kw:kw + W] for kh in range(3) for kw in range(3)]
    patches = jnp.stack(taps, axis=2)            # (N, I, 9, H, W)
    return patches.reshape(N, I * 9, H * W)


def inception_forward(x_nchw, params):
    """x_nchw: (N, I, H, W) float32. Returns (N, C1+C3, H, W) float32 (NCHW, no transposes)."""
    w_comb, bias = params                        # (Cout, 9*I), (Cout, 1)
    N, I, H, W = x_nchw.shape
    Cout, K = w_comb.shape

    p = _im2col_nchw(x_nchw)                     # (N, 9*I, H*W) — single XLA fusion

    out_flat = pl.pallas_call(
        inception_kernel,
        out_shape=jax.ShapeDtypeStruct((N, Cout, H * W), jnp.float32),
        grid_spec=pltpu.PrefetchScalarGridSpec(
            num_scalar_prefetch=0,
            grid=(N,),
            in_specs=[
                pl.BlockSpec((1, K, H * W), lambda n: (n, 0, 0)),
                pl.BlockSpec((Cout, K), lambda n: (0, 0)),
                pl.BlockSpec((Cout, 1), lambda n: (0, 0)),
            ],
            out_specs=pl.BlockSpec((1, Cout, H * W), lambda n: (n, 0, 0)),
        ),
        compiler_params=pltpu.CompilerParams(
            dimension_semantics=("parallel",)),   # size-2 parallel axis -> both TCs on v7x
    )(p, w_comb, bias)

    # Metadata-only reshape: output is already channel-major NCHW.
    return out_flat.reshape(N, Cout, H, W)


def make_params(key, I, C1, C3):
    """Deterministic synthetic parameters (PyTorch layouts), fused/folded for the kernel."""
    ks = jax.random.split(key, 10)
    # Conv weights / biases in PyTorch OIHW layout.
    w1_oihw = jax.random.normal(ks[0], (C1, I, 1, 1), jnp.float32) * 0.2
    b1_conv = jax.random.normal(ks[1], (C1,), jnp.float32) * 0.1
    w3_oihw = jax.random.normal(ks[2], (C3, I, 3, 3), jnp.float32) * 0.2
    b3_conv = jax.random.normal(ks[3], (C3,), jnp.float32) * 0.1
    # BatchNorm (eval-mode) parameters.
    g1 = 1.0 + 0.1 * jax.random.normal(ks[4], (C1,), jnp.float32)
    be1 = 0.1 * jax.random.normal(ks[5], (C1,), jnp.float32)
    m1 = 0.1 * jax.random.normal(ks[6], (C1,), jnp.float32)
    v1 = jnp.abs(jax.random.normal(ks[7], (C1,), jnp.float32)) + 0.5
    g3 = 1.0 + 0.1 * jax.random.normal(ks[8], (C3,), jnp.float32)
    be3 = 0.1 * jax.random.normal(ks[9], (C3,), jnp.float32)
    m3 = jnp.linspace(-0.1, 0.1, C3).astype(jnp.float32)
    v3 = jnp.linspace(0.6, 1.4, C3).astype(jnp.float32)

    # Fold BN (eval) into per-channel scale/bias:  relu((x*w + b - m) * g/sqrt(v+eps) + beta)
    s1 = g1 / jnp.sqrt(v1 + EPS)
    s3 = g3 / jnp.sqrt(v3 + EPS)
    bias1 = (b1_conv - m1) * s1 + be1
    bias3 = (b3_conv - m3) * s3 + be3

    # Combined weight (Cout, 9*I); 1x1 branch lives only on the center tap (kh=kw=1 -> tap 4).
    w1_as_3x3 = jnp.zeros((C1, I, 3, 3), jnp.float32).at[:, :, 1, 1].set(w1_oihw[:, :, 0, 0])
    w_comb = jnp.concatenate([w1_as_3x3.reshape(C1, I * 9),
                              w3_oihw.reshape(C3, I * 9)], axis=0)      # (Cout, 9*I)
    scale = jnp.concatenate([s1, s3])                                   # (Cout,)
    w_comb = w_comb * scale[:, None]                                    # fold BN scale into weights
    bias = jnp.concatenate([bias1, bias3])[:, None]                     # (Cout, 1) fused bias

    kernel_params = (w_comb, bias)
    torch_like = dict(w1=w1_oihw, b1=b1_conv, g1=g1, be1=be1, m1=m1, v1=v1,
                      w3=w3_oihw, b3=b3_conv, g3=g3, be3=be3, m3=m3, v3=v3)
    return kernel_params, torch_like


def reference_forward(x, p):
    """Pure-JAX replica of the PyTorch module (eval-mode BN) for verification."""
    def branch(x, w, b, g, be, m, v, pad):
        y = jax.lax.conv_general_dilated(
            x, w, (1, 1), [(pad, pad), (pad, pad)],
            dimension_numbers=("NCHW", "OIHW", "NCHW"))
        y = y + b[None, :, None, None]
        y = (y - m[None, :, None, None]) / jnp.sqrt(v[None, :, None, None] + EPS)
        y = y * g[None, :, None, None] + be[None, :, None, None]
        return jnp.maximum(y, 0.0)

    y = branch(x, p["w1"], p["b1"], p["g1"], p["be1"], p["m1"], p["v1"], 0)
    z = branch(x, p["w3"], p["b3"], p["g3"], p["be3"], p["m3"], p["v3"], 1)
    return jnp.concatenate([y, z], axis=1)


if __name__ == "__main__":
    N, I, H, W = 2, 4, 16, 16
    C1, C3 = 8, 8

    key = jax.random.PRNGKey(0)
    kx, kp = jax.random.split(key)
    x = jax.random.normal(kx, (N, I, H, W), jnp.float32)

    kernel_params, torch_like = make_params(kp, I, C1, C3)

    fwd = jax.jit(inception_forward)
    out = jax.block_until_ready(fwd(x, kernel_params))

    ref = reference_forward(x, torch_like)
    assert out.shape == (N, C1 + C3, H, W)
    assert jnp.allclose(out, ref, rtol=1e-4, atol=1e-4), "mismatch vs reference"

    print("KERNEL_OK")
</pallas_src>

<mosaic_0001>
module attributes {stable_mosaic.version = 11 : i64} {
  func.func @inception_kernel(%arg0: i32, %arg1: memref<1x36x256xf32, #tpu.memory_space<vmem>>, %arg2: memref<16x36xf32, #tpu.memory_space<vmem>>, %arg3: memref<16x1xf32, #tpu.memory_space<vmem>>, %arg4: memref<1x16x256xf32, #tpu.memory_space<vmem>>) attributes {dimension_semantics = [#tpu.dimension_semantics<parallel>], iteration_bounds = array<i64: 2>, scalar_prefetch = 0 : i64, scratch_operands = 0 : i64, tpu.core_type = #tpu.core_type<tc>, window_params = [{transform_indices = @transform_0, window_bounds = array<i64: 1, 36, 256>}, {pipeline_mode = #tpu.pipeline_mode<synchronous>, transform_indices = @transform_1, window_bounds = array<i64: 16, 36>}, {pipeline_mode = #tpu.pipeline_mode<synchronous>, transform_indices = @transform_2, window_bounds = array<i64: 16, 1>}, {transform_indices = @transform_3, window_bounds = array<i64: 1, 16, 256>}]} {
    %c0 = arith.constant 0 : index
    %c0_0 = arith.constant 0 : index
    %0 = vector.load %arg2[%c0, %c0_0] : memref<16x36xf32, #tpu.memory_space<vmem>>, vector<16x36xf32>
    %c0_1 = arith.constant 0 : index
    %c0_2 = arith.constant 0 : index
    %c0_3 = arith.constant 0 : index
    %1 = vector.load %arg1[%c0_1, %c0_2, %c0_3] : memref<1x36x256xf32, #tpu.memory_space<vmem>>, vector<1x36x256xf32>
    %2 = vector.shape_cast %1 : vector<1x36x256xf32> to vector<36x256xf32>
    %cst = arith.constant dense<0.000000e+00> : vector<16x256xf32>
    %3 = tpu.matmul %0, %2, %cst {dimension_numbers = #tpu.dot_dimension_numbers<[1], [0], [0], [1], [0, 0, 1, 1], [], []>} : vector<16x36xf32>, vector<36x256xf32>, vector<16x256xf32> -> vector<16x256xf32>
    %c0_4 = arith.constant 0 : index
    %c0_5 = arith.constant 0 : index
    %4 = vector.load %arg3[%c0_4, %c0_5] : memref<16x1xf32, #tpu.memory_space<vmem>>, vector<16x1xf32>
    %5 = vector.broadcast %4 : vector<16x1xf32> to vector<16x256xf32>
    %6 = arith.addf %3, %5 : vector<16x256xf32>
    %cst_6 = arith.constant 0.000000e+00 : f32
    %7 = vector.broadcast %cst_6 : f32 to vector<16x256xf32>
    %8 = arith.maximumf %6, %7 : vector<16x256xf32>
    %c0_7 = arith.constant 0 : index
    %c0_8 = arith.constant 0 : index
    %c0_9 = arith.constant 0 : index
    %9 = vector.load %arg4[%c0_7, %c0_8, %c0_9] : memref<1x16x256xf32, #tpu.memory_space<vmem>>, vector<1x16x256xf32>
    %10 = vector.shape_cast %9 : vector<1x16x256xf32> to vector<16x256xf32>
    %11 = vector.shape_cast %8 : vector<16x256xf32> to vector<1x16x256xf32>
    tpu.vector_store %arg4[%c0_7, %c0_8, %c0_9], %11 {strides = array<i32>} : memref<1x16x256xf32, #tpu.memory_space<vmem>>, vector<1x16x256xf32>,
    return
  }
  func.func @transform_0(%arg0: i32) -> (i32, i32, i32) {
    %c0_i32 = arith.constant 0 : i32
    %c0_i32_0 = arith.constant 0 : i32
    %c0_i32_1 = arith.constant 0 : i32
    return %arg0, %c0_i32, %c0_i32_0 : i32, i32, i32
  }
  func.func @transform_1(%arg0: i32) -> (i32, i32) {
    %c0_i32 = arith.constant 0 : i32
    %c0_i32_0 = arith.constant 0 : i32
    %c0_i32_1 = arith.constant 0 : i32
    return %c0_i32, %c0_i32_0 : i32, i32
  }
  func.func @transform_2(%arg0: i32) -> (i32, i32) {
    %c0_i32 = arith.constant 0 : i32
    %c0_i32_0 = arith.constant 0 : i32
    %c0_i32_1 = arith.constant 0 : i32
    return %c0_i32, %c0_i32_0 : i32, i32
  }
  func.func @transform_3(%arg0: i32) -> (i32, i32, i32) {
    %c0_i32 = arith.constant 0 : i32
    %c0_i32_0 = arith.constant 0 : i32
    %c0_i32_1 = arith.constant 0 : i32
    return %arg0, %c0_i32, %c0_i32_0 : i32, i32, i32
  }
}

</mosaic_0001>

<bundles_post_ra>
// kernel: inception_forward.1
= control target key start
LH: loop header
LB: loop body
LE: loop exit
PB: predicated region body
PF: predicated region fallthrough
CT: control target
= control target key end

     0   :  { %s416_s12 = smov 0   ;;  %s449_s0 = inlined_call_operand.vmem [shape: f32[2,36,256], index: 0, kind: input, shape index: {}]   ;;  %s450_s1 = inlined_call_operand.vmem [shape: f32[16,36], index: 1, kind: input, shape index: {}]   ;;  %s451_s2 = inlined_call_operand.vmem [shape: f32[16,1], index: 2, kind: input, shape index: {}]   ;;  %s452_s3 = inlined_call_operand.vmem [shape: f32[2,16,256], index: 3, kind: output, shape index: {}]  }
   0x1 LB: > { %s349_s13 = sadd.s32 4294967295, %s392_s12   ;;  %p353_p0 = scmp.ge.s32.totalorder %s392_s12, 1  ;;  %s392_s12 = sphi %s416_s12, %s13_s12  }
   0x2   : > { %p137_p1 = scmp.lt.s32.totalorder %s392_s12, 3 }
   0x4   : > { %p138_p2 = pnand %p353_p0, %p137_p1 }
   0x5   : > { %p161_p3 = scmp.lt.s32.totalorder (!%p138_p2), %s349_s13, 1 }
   0x6   : > { %141 = sbr.rel (%p138_p2) target bundleno = 227 (0xe3), region = 32 }
   0xb   : > { %v394_v0 = vmov 0.0   ;;  %v183_v1 = vld [vmem:[%s451_s2] sm:$0xff]  ;;  %s454_s13 = smov (!%p161_p3, %s349_s13), 1  ;;  %v395_v2 = vmov 0   ;;  %v184_v3 = vld [vmem:[%s451_s2 + $0x8] sm:$0xff]  ;;  %vm202_vm0 = vcmask 1043456  }
   0xc   : > { %273 = vmatprep.mubr.f32.mxu0 %v394_v0  ;;  %279 = vmatprep.mubr.f32.mxu1 %v394_v0  ;;  %s374_s16 = smul.u32 80, %s454_s13  ;;  %v171_v14 = vld [vmem:[%s450_s1] sm:$0xff]  ;;  %vm195_vm1 = vcmask 293888   ;;  %v172_v15 = vld [vmem:[%s450_s1 + $0x8] sm:$0xff]  ;;  %s363_s26 = sshll.u32 %s454_s13, 5 }
   0xd   : > { %385 = vset.pattern.permute.xlu0 %v395_v2  ;;  %s170_s29 = scalar_lea.vmem %s452_s3, %s363_s26 }
   0xe   : > { %187 = vperm.xlu0 %385, %v183_v1   ;;  %s165_s21 = scalar_lea.vmem %s449_s0, %s374_s16 }
   0xf   : > { %v182_v4 = vld [vmem:[%s165_s21 + $0x48] sm:$0xf]  ;;  %v181_v5 = vld [vmem:[%s165_s21 + $0x40] sm:$0xf]  ;;  %v180_v6 = vld [vmem:[%s165_s21 + $0x38] sm:$0xff] }
  0x10   : > { %357 = vmatprep.subr.msk.mxu0 %vm202_vm0, %v182_v4  ;;  %364 = vmatprep.subr.msk.mxu1 %vm202_vm0, %v182_v4  ;;  %v179_v7 = vld [vmem:[%s165_s21 + $0x30] sm:$0xff]  ;;  %v178_v8 = vld [vmem:[%s165_s21 + $0x28] sm:$0xff]  ;;  %v177_v9 = vld [vmem:[%s165_s21 + $0x20] sm:$0xff] }
  0x11   : > { %358 = vmatpush1.msk.msra.mxu0 %vm202_vm0, %v181_v5  ;;  %369 = vmatpush1.msk.msra.mxu1 %vm202_vm0, %v181_v5  ;;  %v176_v10 = vld [vmem:[%s165_s21 + $0x18] sm:$0xff]  ;;  %v175_v11 = vld [vmem:[%s165_s21 + $0x10] sm:$0xff]  ;;  %v174_v12 = vld [vmem:[%s165_s21 + $0x8] sm:$0xff] }
  0x12   : > { %192 = vperm.xlu0 %385, %v184_v3   ;;  %233 = vmatprep.subr.mxu0 %v180_v6  ;;  %v173_v13 = vld [vmem:[%s165_s21] sm:$0xff] }
  0x13   : > { %365 = vmatprep.subr.mxu1 %v180_v6  ;;  %234 = vmatpush1.msra.mxu0 %v179_v7 }
  0x14   : > { %370 = vmatpush1.msra.mxu1 %v179_v7  ;;  %235 = vmatprep.subr.mxu0 %v178_v8 }
  0x15   : > { %366 = vmatprep.subr.mxu1 %v178_v8  ;;  %236 = vmatpush1.msra.mxu0 %v177_v9 }
  0x16   : > { %371 = vmatpush1.msra.mxu1 %v177_v9  ;;  %237 = vmatprep.subr.mxu0 %v176_v10 }
  0x17   : > { %367 = vmatprep.subr.mxu1 %v176_v10  ;;  %238 = vmatpush1.msra.mxu0 %v175_v11 }
  0x18   : > { %372 = vmatpush1.msra.mxu1 %v175_v11  ;;  %239 = vmatprep.subr.mxu0 %v174_v12 }
  0x19   : > { %368 = vmatprep.subr.mxu1 %v174_v12  ;;  %240 = vmatpush1.msra.mxu0 %v173_v13 }
  0x1a   : > { %373 = vmatpush1.msra.mxu1 %v173_v13  ;;  %359 = vmatmul.mubr.msk.f32.vlgmr.msra.gmra.mxu0 %vm195_vm1, %v171_v14 }
  0x1b   : > { %360 = vmatmul.mubr.msk.f32.vlgmr.msra.gmra.mxu1 %vm195_vm1, %v172_v15 }
  0x89   : > { %v188_v16 = vpop.permute.xlu0 %187 }
  0x8d   : > { %v193_v17 = vpop.permute.xlu0 %192 }
  0xda   : > { %v275_v18 = vpop.f32.mrf.mxu0 }
  0xdb   : > { %v281_v19 = vpop.f32.mrf.mxu1  ;;  %v276_v20 = vadd.f32 %v275_v18, %v188_v16 }
  0xdc   : > { %v282_v21 = vadd.f32 %v281_v19, %v193_v17  ;;  %v277_v22 = vpop.f32.mrf.mxu0 }
  0xdd   : > { %v283_v23 = vpop.f32.mrf.mxu1  ;;  %v286_v24 = vmax.f32 %v276_v20, 0.0  ;;  %v278_v26 = vadd.f32 %v277_v22, %v188_v16 }
  0xde   : > { %v288_v25 = vmax.f32 %v282_v21, 0.0  ;;  %v284_v27 = vadd.f32 %v283_v23, %v193_v17 }
  0xdf   : > { %290 = vst [vmem:[%s170_s29] sm:$0xff] %v286_v24  ;;  %v287_v28 = vmax.f32 %v278_v26, 0.0 }
  0xe0   : > { %292 = vst [vmem:[%s170_s29 + $0x10] sm:$0xff] %v288_v25  ;;  %v289_v29 = vmax.f32 %v284_v27, 0.0 }
  0xe1   : > { %291 = vst [vmem:[%s170_s29 + $0x8] sm:$0xff] %v287_v28 }
  0xe2   : > { %293 = vst [vmem:[%s170_s29 + $0x18] sm:$0xff] %v289_v29 }
  0xe3 PF: > { %s13_s12 = sadd.s32 1, %s392_s12  }
  0xe4   : > { %p10_p4 = scmp.ge.s32.totalorder %s13_s12, 4  }
  0xe6   :  { %12 = sbr.rel (!%p10_p4) target bundleno = 1 (0x1), region = 62 }

</bundles_post_ra>
